<compile_context>
chip_gen: v6e
topology: v6e:2x2x1
jax: 0.10.0
libtpu: 0.0.40
codegen_flags: <defaults>
</compile_context>

<pallas_src>
import functools

import jax
import jax.numpy as jnp
from jax.experimental import pallas as pl
from jax.experimental.pallas import tpu as pltpu


def _round_up(x, m):
    return ((x + m - 1) // m) * m


def _categorical_mlp_kernel(x_ref, w1_ref, b1_ref, w2_ref, b2_ref, logits_ref,
                            *, out_dim):
    # hidden = relu(x @ W1 + b1)   (bf16 inputs, f32 MXU accumulation)
    h = jnp.dot(x_ref[...], w1_ref[...], preferred_element_type=jnp.float32)
    h = jnp.maximum(h + b1_ref[...], 0.0)          # b1 is (1, hid) -> broadcasts

    # raw logits = hidden @ W2 + b2
    raw = jnp.dot(h.astype(w2_ref.dtype), w2_ref[...],
                  preferred_element_type=jnp.float32)
    raw = raw + b2_ref[...]                        # b2 is (1, out) -> broadcasts

    # Mask the lane-padding columns so the softmax normalization is unchanged.
    out_p = raw.shape[-1]
    if out_p != out_dim:
        col = jax.lax.broadcasted_iota(jnp.int32, raw.shape, raw.ndim - 1)
        raw = jnp.where(col < out_dim, raw, -jnp.inf)

    # OneHotCategorical(logits=raw) normalizes its logits via log_softmax.
    m = jnp.max(raw, axis=-1, keepdims=True)
    shifted = raw - m
    denom = jnp.sum(jnp.exp(shifted), axis=-1, keepdims=True)
    logits_ref[...] = (shifted - jnp.log(denom)).astype(logits_ref.dtype)


@functools.partial(
    jax.jit,
    static_argnames=("block_b", "compute_dtype", "out_dtype", "return_probs"))
def categorical_network_forward(x, w1, b1, w2, b2, *, block_b=256,
                                compute_dtype=jnp.bfloat16,
                                out_dtype=jnp.float32,
                                return_probs=True):
    """Normalized logits (and probs) of OneHotCategorical(logits=MLP(x)).

    Weights are laid out as W1:[in,hid], W2:[hid,out] (transposed vs torch).
    block_b=256 suits v6e/v7x; pass block_b=128 on v5e.
    """
    batch, in_dim = x.shape
    hidden_dim = w1.shape[1]
    out_dim = w2.shape[1]

    # Lane-pad every feature axis to a multiple of 128 (lane-dense vregs/stores).
    in_p = _round_up(in_dim, 128)
    hid_p = _round_up(hidden_dim, 128)
    out_p = _round_up(out_dim, 128)

    # Batch tile: fill the MXU rows, clamped so tiny batches still work.
    blk = min(block_b, _round_up(batch, 8))
    batch_p = _round_up(batch, blk)
    grid = (batch_p // blk,)

    b1 = jnp.asarray(b1, jnp.float32).reshape(1, -1)
    b2 = jnp.asarray(b2, jnp.float32).reshape(1, -1)

    x_p = jnp.pad(x.astype(compute_dtype),
                  ((0, batch_p - batch), (0, in_p - in_dim)))
    w1_p = jnp.pad(w1.astype(compute_dtype),
                   ((0, in_p - in_dim), (0, hid_p - hidden_dim)))
    w2_p = jnp.pad(w2.astype(compute_dtype),
                   ((0, hid_p - hidden_dim), (0, out_p - out_dim)))
    b1_p = jnp.pad(b1, ((0, 0), (0, hid_p - hidden_dim)))
    b2_p = jnp.pad(b2, ((0, 0), (0, out_p - out_dim)))

    # Resident weights: their index_map is constant, so double-buffering them is
    # pure VMEM waste once they are large (v7x has only 64 MiB VMEM).
    itemsize = jnp.dtype(compute_dtype).itemsize
    weight_bytes = (in_p * hid_p + hid_p * out_p) * itemsize
    single_buffer_weights = weight_bytes > (8 << 20)
    # TODO(synk): once bf16 W1/W2 approach the v7x 64 MiB VMEM ceiling, add a
    # K-reduction grid axis ("arbitrary") + VMEM accumulator instead of keeping
    # the full weights resident.

    def resident_spec(shape):
        if single_buffer_weights:
            return pl.BlockSpec(shape, lambda i: (0, 0),
                                pipeline_mode=pl.Buffered(1))
        return pl.BlockSpec(shape, lambda i: (0, 0))

    out_itemsize = jnp.dtype(out_dtype).itemsize
    vmem_est = (
        (1 if single_buffer_weights else 2) * weight_bytes
        + 2 * (hid_p + out_p) * 4                              # biases (f32)
        + 2 * blk * (in_p * itemsize + out_p * out_itemsize)   # x / logits tiles
        + blk * hid_p * 4 + 4 * blk * out_p * 4                # f32 intermediates
        + (4 << 20))                                           # headroom
    vmem_limit = int(min(100 << 20, max(32 << 20, vmem_est)))

    logits_p = pl.pallas_call(
        functools.partial(_categorical_mlp_kernel, out_dim=out_dim),
        out_shape=jax.ShapeDtypeStruct((batch_p, out_p), out_dtype),
        grid_spec=pltpu.PrefetchScalarGridSpec(
            num_scalar_prefetch=0,
            grid=grid,
            in_specs=[
                pl.BlockSpec((blk, in_p), lambda i: (i, 0)),    # x tile
                resident_spec((in_p, hid_p)),                   # W1 (resident)
                resident_spec((1, hid_p)),                      # b1
                resident_spec((hid_p, out_p)),                  # W2 (resident)
                resident_spec((1, out_p)),                      # b2
            ],
            out_specs=pl.BlockSpec((blk, out_p), lambda i: (i, 0)),
        ),
        compiler_params=pltpu.CompilerParams(
            dimension_semantics=("parallel",),
            vmem_limit_bytes=vmem_limit,
        ),
    )(x_p, w1_p, b1_p, w2_p, b2_p)

    logits = logits_p[:batch, :out_dim]
    if return_probs:
        # probs = softmax(raw) = exp(normalized logits); computed outside the
        # kernel so the kernel writes half the HBM bytes.
        return logits, jnp.exp(logits)
    return logits


def init_params(key, in_dim, out_dim, hidden_dim=None):
    """Deterministic init mirroring nn.Linear's U(-1/sqrt(fan_in), 1/sqrt(fan_in))."""
    if hidden_dim is None:
        hidden_dim = in_dim
    k1, k2, k3, k4 = jax.random.split(key, 4)
    lim1 = 1.0 / jnp.sqrt(in_dim)
    lim2 = 1.0 / jnp.sqrt(hidden_dim)
    w1 = jax.random.uniform(k1, (in_dim, hidden_dim), jnp.float32, -lim1, lim1)
    b1 = jax.random.uniform(k2, (1, hidden_dim), jnp.float32, -lim1, lim1)
    w2 = jax.random.uniform(k3, (hidden_dim, out_dim), jnp.float32, -lim2, lim2)
    b2 = jax.random.uniform(k4, (1, out_dim), jnp.float32, -lim2, lim2)
    return w1, b1, w2, b2


if __name__ == "__main__":
    # Small shapes consistent with the module: x is [batch, in_dim].
    batch, in_dim, hidden_dim, out_dim = 8, 32, 32, 16

    key = jax.random.PRNGKey(0)
    kx, kp = jax.random.split(key)
    x = jax.random.normal(kx, (batch, in_dim), jnp.float32)
    w1, b1, w2, b2 = init_params(kp, in_dim, out_dim, hidden_dim)

    logits, probs = categorical_network_forward(x, w1, b1, w2, b2)
    jax.block_until_ready((logits, probs))

    # Pure-JAX reference with the same bf16-input / f32-accumulate math.
    cd = jnp.bfloat16
    h_ref = jnp.maximum(
        jnp.dot(x.astype(cd), w1.astype(cd),
                preferred_element_type=jnp.float32) + b1, 0.0)
    raw_ref = jnp.dot(h_ref.astype(cd), w2.astype(cd),
                      preferred_element_type=jnp.float32) + b2
    logits_ref = jax.nn.log_softmax(raw_ref, axis=-1)
    probs_ref = jax.nn.softmax(raw_ref, axis=-1)

    assert logits.shape == (batch, out_dim) and probs.shape == (batch, out_dim)
    assert jnp.allclose(logits, logits_ref, atol=1e-2, rtol=1e-2)
    assert jnp.allclose(probs, probs_ref, atol=1e-2, rtol=1e-2)
    assert jnp.allclose(jnp.sum(probs, axis=-1), 1.0, atol=1e-4)

    # TODO(synk): the torch module returns a OneHotCategorical distribution
    # object; sampling / one-hot draws / entropy are host-side glue over the
    # normalized logits and are not part of the kernel hot path.
    print("KERNEL_OK")
</pallas_src>

<mosaic_0001>
module attributes {stable_mosaic.version = 11 : i64} {
  func.func @_categorical_mlp_kernel(%arg0: i32, %arg1: memref<8x128xbf16, #tpu.memory_space<vmem>>, %arg2: memref<128x128xbf16, #tpu.memory_space<vmem>>, %arg3: memref<1x128xf32, #tpu.memory_space<vmem>>, %arg4: memref<128x128xbf16, #tpu.memory_space<vmem>>, %arg5: memref<1x128xf32, #tpu.memory_space<vmem>>, %arg6: memref<8x128xf32, #tpu.memory_space<vmem>>) attributes {dimension_semantics = [#tpu.dimension_semantics<parallel>], iteration_bounds = array<i64: 1>, scalar_prefetch = 0 : i64, scratch_operands = 0 : i64, tpu.core_type = #tpu.core_type<tc>, window_params = [{transform_indices = @transform_0, window_bounds = array<i64: 8, 128>}, {pipeline_mode = #tpu.pipeline_mode<synchronous>, transform_indices = @transform_1, window_bounds = array<i64: 128, 128>}, {pipeline_mode = #tpu.pipeline_mode<synchronous>, transform_indices = @transform_2, window_bounds = array<i64: 1, 128>}, {pipeline_mode = #tpu.pipeline_mode<synchronous>, transform_indices = @transform_3, window_bounds = array<i64: 128, 128>}, {pipeline_mode = #tpu.pipeline_mode<synchronous>, transform_indices = @transform_4, window_bounds = array<i64: 1, 128>}, {transform_indices = @transform_5, window_bounds = array<i64: 8, 128>}]} {
    %c0 = arith.constant 0 : index
    %c0_0 = arith.constant 0 : index
    %0 = vector.load %arg1[%c0, %c0_0] : memref<8x128xbf16, #tpu.memory_space<vmem>>, vector<8x128xbf16>
    %c0_1 = arith.constant 0 : index
    %c0_2 = arith.constant 0 : index
    %1 = vector.load %arg2[%c0_1, %c0_2] : memref<128x128xbf16, #tpu.memory_space<vmem>>, vector<128x128xbf16>
    %cst = arith.constant dense<0.000000e+00> : vector<8x128xf32>
    %2 = tpu.matmul %0, %1, %cst {dimension_numbers = #tpu.dot_dimension_numbers<[1], [0], [0], [1], [0, 0, 1, 1], [], []>} : vector<8x128xbf16>, vector<128x128xbf16>, vector<8x128xf32> -> vector<8x128xf32>
    %c0_3 = arith.constant 0 : index
    %c0_4 = arith.constant 0 : index
    %3 = vector.load %arg3[%c0_3, %c0_4] : memref<1x128xf32, #tpu.memory_space<vmem>>, vector<1x128xf32>
    %4 = vector.broadcast %3 : vector<1x128xf32> to vector<8x128xf32>
    %5 = arith.addf %2, %4 : vector<8x128xf32>
    %cst_5 = arith.constant 0.000000e+00 : f32
    %6 = vector.broadcast %cst_5 : f32 to vector<8x128xf32>
    %7 = arith.maximumf %5, %6 : vector<8x128xf32>
    %8 = arith.truncf %7 : vector<8x128xf32> to vector<8x128xbf16>
    %c0_6 = arith.constant 0 : index
    %c0_7 = arith.constant 0 : index
    %9 = vector.load %arg4[%c0_6, %c0_7] : memref<128x128xbf16, #tpu.memory_space<vmem>>, vector<128x128xbf16>
    %cst_8 = arith.constant dense<0.000000e+00> : vector<8x128xf32>
    %10 = tpu.matmul %8, %9, %cst_8 {dimension_numbers = #tpu.dot_dimension_numbers<[1], [0], [0], [1], [0, 0, 1, 1], [], []>} : vector<8x128xbf16>, vector<128x128xbf16>, vector<8x128xf32> -> vector<8x128xf32>
    %c0_9 = arith.constant 0 : index
    %c0_10 = arith.constant 0 : index
    %11 = vector.load %arg5[%c0_9, %c0_10] : memref<1x128xf32, #tpu.memory_space<vmem>>, vector<1x128xf32>
    %12 = vector.broadcast %11 : vector<1x128xf32> to vector<8x128xf32>
    %13 = arith.addf %10, %12 : vector<8x128xf32>
    %14 = tpu.iota {dimensions = array<i32: 1>} : vector<8x128xi32>
    %c16_i32 = arith.constant 16 : i32
    %15 = vector.broadcast %c16_i32 : i32 to vector<8x128xi32>
    %16 = arith.cmpi slt, %14, %15 : vector<8x128xi32>
    %cst_11 = arith.constant 0xFF800000 : f32
    %17 = vector.broadcast %cst_11 : f32 to vector<8x128xf32>
    %18 = arith.select %16, %13, %17 : vector<8x128xi1>, vector<8x128xf32>
    %cst_12 = arith.constant dense<0xFF800000> : vector<8xf32>
    %19 = vector.multi_reduction <maximumf>, %18, %cst_12 [1] : vector<8x128xf32> to vector<8xf32>
    %20 = vector.shape_cast %19 : vector<8xf32> to vector<8x1xf32>
    %21 = vector.broadcast %20 : vector<8x1xf32> to vector<8x128xf32>
    %22 = arith.subf %18, %21 : vector<8x128xf32>
    %23 = math.exp %22 : vector<8x128xf32>
    %cst_13 = arith.constant dense<0.000000e+00> : vector<8xf32>
    %24 = vector.multi_reduction <add>, %23, %cst_13 [1] : vector<8x128xf32> to vector<8xf32>
    %25 = vector.shape_cast %24 : vector<8xf32> to vector<8x1xf32>
    %26 = math.log %25 : vector<8x1xf32>
    %27 = vector.broadcast %26 : vector<8x1xf32> to vector<8x128xf32>
    %28 = arith.subf %22, %27 : vector<8x128xf32>
    %c0_14 = arith.constant 0 : index
    %c0_15 = arith.constant 0 : index
    %29 = vector.load %arg6[%c0_14, %c0_15] : memref<8x128xf32, #tpu.memory_space<vmem>>, vector<8x128xf32>
    tpu.vector_store %arg6[%c0_14, %c0_15], %28 {strides = array<i32>} : memref<8x128xf32, #tpu.memory_space<vmem>>, vector<8x128xf32>,
    return
  }
  func.func @transform_0(%arg0: i32) -> (i32, i32) {
    %c0_i32 = arith.constant 0 : i32
    %c0_i32_0 = arith.constant 0 : i32
    return %arg0, %c0_i32 : i32, i32
  }
  func.func @transform_1(%arg0: i32) -> (i32, i32) {
    %c0_i32 = arith.constant 0 : i32
    %c0_i32_0 = arith.constant 0 : i32
    %c0_i32_1 = arith.constant 0 : i32
    return %c0_i32, %c0_i32_0 : i32, i32
  }
  func.func @transform_2(%arg0: i32) -> (i32, i32) {
    %c0_i32 = arith.constant 0 : i32
    %c0_i32_0 = arith.constant 0 : i32
    %c0_i32_1 = arith.constant 0 : i32
    return %c0_i32, %c0_i32_0 : i32, i32
  }
  func.func @transform_3(%arg0: i32) -> (i32, i32) {
    %c0_i32 = arith.constant 0 : i32
    %c0_i32_0 = arith.constant 0 : i32
    %c0_i32_1 = arith.constant 0 : i32
    return %c0_i32, %c0_i32_0 : i32, i32
  }
  func.func @transform_4(%arg0: i32) -> (i32, i32) {
    %c0_i32 = arith.constant 0 : i32
    %c0_i32_0 = arith.constant 0 : i32
    %c0_i32_1 = arith.constant 0 : i32
    return %c0_i32, %c0_i32_0 : i32, i32
  }
  func.func @transform_5(%arg0: i32) -> (i32, i32) {
    %c0_i32 = arith.constant 0 : i32
    %c0_i32_0 = arith.constant 0 : i32
    return %arg0, %c0_i32 : i32, i32
  }
}

</mosaic_0001>

<bundles_post_ra>
// kernel: categorical_network_forward.1
= control target key start
LH: loop header
LB: loop body
LE: loop exit
PB: predicated region body
PF: predicated region fallthrough
CT: control target
= control target key end

     0   :  { %v363_v0 = vmov 0.0   ;;  %vm364_vm0 = vmmov 0   ;;  %v246_v26 = vlaneseq  ;;  %s455_s1 = inlined_call_operand.vmem [shape: bf16[128,128], index: 1, kind: input, shape index: {}]   ;;  %s456_s3 = inlined_call_operand.vmem [shape: bf16[128,128], index: 3, kind: input, shape index: {}]   ;;  %s457_s0 = inlined_call_operand.vmem [shape: bf16[8,128], index: 0, kind: input, shape index: {}]   ;;  %s458_s2 = inlined_call_operand.vmem [shape: f32[1,128], index: 2, kind: input, shape index: {}]   ;;  %s459_s4 = inlined_call_operand.vmem [shape: f32[1,128], index: 4, kind: input, shape index: {}]   ;;  %s460_s5 = inlined_call_operand.vmem [shape: f32[8,128], index: 5, kind: output, shape index: {}]  }
   0x1   :  { %301 = vmatprep.subr.bf16.mxu0 %v363_v0  ;;  %v343_v1 = vld [vmem:[%s455_s1 + $0x38] sm:$0xff]   ;;  %317 = vmatprep.mubr.msk.bf16.mxu0 %vm364_vm0, %v363_v0  ;;  %v344_v2 = vld [vmem:[%s455_s1 + $0x30] sm:$0xff]   ;;  %v345_v3 = vld [vmem:[%s455_s1 + $0x28] sm:$0xff]  }
   0x2   :  { %321 = vmatprep.subr.bf16.mxu1 %v363_v0  ;;  %337 = vmatprep.mubr.msk.bf16.mxu1 %vm364_vm0, %v363_v0  ;;  %v351_v4 = vld [vmem:[%s456_s3 + $0x38] sm:$0xff]   ;;  %v346_v5 = vld [vmem:[%s455_s1 + $0x20] sm:$0xff]   ;;  %v352_v6 = vld [vmem:[%s456_s3 + $0x30] sm:$0xff]   ;;  %v247_v27 = vand.u32 127, %v246_v26 }
   0x3   :  { %302 = vmatpush3.bf16.msra.mxu0 %v343_v1  ;;  %322 = vmatpush3.bf16.msra.mxu1 %v351_v4  ;;  %v347_v7 = vld [vmem:[%s455_s1 + $0x18] sm:$0xff]   ;;  %v353_v8 = vld [vmem:[%s456_s3 + $0x28] sm:$0xff]   ;;  %v348_v9 = vld [vmem:[%s455_s1 + $0x10] sm:$0xff]  }
   0x4   :  { %303 = vmatprep.subr.bf16.mxu0 %v363_v0  ;;  %323 = vmatprep.subr.bf16.mxu1 %v363_v0  ;;  %v354_v10 = vld [vmem:[%s456_s3 + $0x20] sm:$0xff]   ;;  %v349_v11 = vld [vmem:[%s455_s1 + $0x8] sm:$0xff]   ;;  %v355_v12 = vld [vmem:[%s456_s3 + $0x18] sm:$0xff]   ;;  %vm248_vm1 = vcmp.lt.s32.totalorder %v247_v27, 16 }
   0x5   :  { %v350_v13 = vld [vmem:[%s455_s1] sm:$0xff]   ;;  %v356_v14 = vld [vmem:[%s456_s3 + $0x10] sm:$0xff]   ;;  %v357_v16 = vld [vmem:[%s456_s3 + $0x8] sm:$0xff]  }
   0x6   :  { %v21_v15 = vld [vmem:[%s457_s0] sm:$0xf] }
   0x7   :  { %304 = vmatpush3.bf16.msra.mxu0 %v344_v2  ;;  %324 = vmatpush3.bf16.msra.mxu1 %v352_v6  ;;  %v358_v17 = vld [vmem:[%s456_s3] sm:$0xff]  }
   0x8   :  { %305 = vmatprep.subr.bf16.mxu0 %v363_v0  ;;  %325 = vmatprep.subr.bf16.mxu1 %v363_v0  ;;  %v265_v18 = vld [vmem:[%s458_s2] ss:$0 sm:$0xff] }
   0x9   :  { %v274_v28 = vld [vmem:[%s459_s4] ss:$0 sm:$0xff] }
   0xb   :  { %306 = vmatpush3.bf16.msra.mxu0 %v345_v3  ;;  %326 = vmatpush3.bf16.msra.mxu1 %v353_v8 }
   0xc   :  { %307 = vmatprep.subr.bf16.mxu0 %v363_v0  ;;  %327 = vmatprep.subr.bf16.mxu1 %v363_v0 }
   0xf   :  { %308 = vmatpush3.bf16.msra.mxu0 %v346_v5  ;;  %328 = vmatpush3.bf16.msra.mxu1 %v354_v10 }
  0x10   :  { %309 = vmatprep.subr.bf16.mxu0 %v363_v0  ;;  %329 = vmatprep.subr.bf16.mxu1 %v363_v0 }
  0x13   :  { %310 = vmatpush3.bf16.msra.mxu0 %v347_v7  ;;  %330 = vmatpush3.bf16.msra.mxu1 %v355_v12 }
  0x14   :  { %311 = vmatprep.subr.bf16.mxu0 %v363_v0  ;;  %331 = vmatprep.subr.bf16.mxu1 %v363_v0 }
  0x17   :  { %312 = vmatpush3.bf16.msra.mxu0 %v348_v9  ;;  %332 = vmatpush3.bf16.msra.mxu1 %v356_v14 }
  0x18   :  { %313 = vmatprep.subr.bf16.mxu0 %v363_v0  ;;  %333 = vmatprep.subr.bf16.mxu1 %v363_v0 }
  0x1b   :  { %314 = vmatpush3.bf16.msra.mxu0 %v349_v11  ;;  %334 = vmatpush3.bf16.msra.mxu1 %v357_v16 }
  0x1c   :  { %315 = vmatprep.subr.bf16.mxu0 %v363_v0  ;;  %335 = vmatprep.subr.bf16.mxu1 %v363_v0 }
  0x1f   :  { %316 = vmatpush3.bf16.msra.mxu0 %v350_v13  ;;  %336 = vmatpush3.bf16.msra.mxu1 %v358_v17 }
  0x22   :  { %318 = vmatmul.mubr.bf16.vlgmr.msra.gmra.mxu0 %v21_v15 }
  0xe2   :  { %v127_v19 = vpop.f32.mrf.mxu0 }
  0xe3   :  { %v128_v20 = vadd.f32 %v265_v18, %v127_v19 }
  0xe4   :  { %v319_v21 = vpop.f32.mrf.mxu0 }
  0xe5   :  { %v133_v22 = vmax.f32 %v128_v20, 0.0 }
  0xe6   :  { %v130_v23 = vpop.f32.mrf.mxu0 }
  0xe7   :  { %v134_v24 = vpack.c.bf16 %v133_v22, %v133_v22 }
  0xe8   :  { %v320_v25 = vpop.f32.mrf.mxu0 }
  0xe9   :  { %338 = vmatmul.mubr.bf16.vlgmr.msra.gmra.mxu1 %v134_v24 }
 0x1a9   :  { %v240_v29 = vpop.f32.mrf.mxu1 }
 0x1aa   :  { %v241_v30 = vadd.f32 %v274_v28, %v240_v29 }
 0x1ab   :  { %v339_v31 = vpop.f32.mrf.mxu1 }
 0x1ac   :  { %v249_v32 = vsel %vm248_vm1, %v241_v30, -inf }
 0x1ad   :  { %250 = vmax.xlane.f32.xlu0 %v249_v32  ;;  %v243_v33 = vpop.f32.mrf.mxu1 }
 0x1af   :  { %v340_v34 = vpop.f32.mrf.mxu1 }
 0x236   :  { %v251_v35 = vpop.xlane.xlu0 %250 }
 0x237   :  { %v252_v36 = vsub.f32 %v249_v32, %v251_v35 }
 0x239   :  { %v253_v37 = vmul.f32 1.442695, %v252_v36 }
 0x23b   :  { %359 = vpow2.f32 %v253_v37 }
 0x248   :  { %v360_v38 = vpop.eup %359 }
 0x249   :  { %255 = vadd.xlane.f32.xlu0 %v360_v38 }
 0x2d2   :  { %v256_v39 = vpop.xlane.xlu0 %255 }
 0x2d3   :  { %361 = vlog2.f32 %v256_v39 }
 0x2e0   :  { %v362_v40 = vpop.eup %361 }
 0x2e1   :  { %v258_v41 = vmul.f32 0.6931472, %v362_v40 }
 0x2e3   :  { %v259_v42 = vsub.f32 %v252_v36, %v258_v41 }
 0x2e5   :  { %260 = vst [vmem:[%s460_s5] sm:$0xff] %v259_v42 }

</bundles_post_ra>
